<compile_context>
chip_gen: v7x
topology: tpu7x:2x2x1
jax: 0.10.0
libtpu: 0.0.40
codegen_flags: <defaults>
</compile_context>

<pallas_src>
import functools

import jax
import jax.numpy as jnp
from jax.experimental import pallas as pl
from jax.experimental.pallas import tpu as pltpu


def _round_up(x, m):
    return ((x + m - 1) // m) * m


def _projection_bias_kernel(x_ref, w_ref, b_ref, o_ref, acc_ref):
    k = pl.program_id(1)

    @pl.when(k == 0)
    def _():
        # Fold the bias into the accumulator init (added exactly once).
        acc_ref[...] = b_ref[...].astype(jnp.float32)

    acc_ref[...] += jnp.dot(
        x_ref[...], w_ref[...], preferred_element_type=jnp.float32
    )

    @pl.when(k == pl.num_programs(1) - 1)
    def _():
        o_ref[...] = acc_ref[...].astype(o_ref.dtype)


def _projection_nobias_kernel(x_ref, w_ref, o_ref, acc_ref):
    k = pl.program_id(1)

    @pl.when(k == 0)
    def _():
        acc_ref[...] = jnp.zeros_like(acc_ref)

    acc_ref[...] += jnp.dot(
        x_ref[...], w_ref[...], preferred_element_type=jnp.float32
    )

    @pl.when(k == pl.num_programs(1) - 1)
    def _():
        o_ref[...] = acc_ref[...].astype(o_ref.dtype)


def projection_forward(x, weight, bias=None, *, tn=512, tk=1024):
    """Pallas equivalent of Projection.forward.

    x:      any 2-D float array; flattened to (1, num_in) when x.shape[0] != 1
    weight: (num_in, num_out) float32
    bias:   (1, num_out) float32 or None
    returns (1, num_out) float32
    """
    # torch: if x.size()[0] != 1: x = x.view(1, -1)
    if x.shape[0] != 1:
        x = x.reshape(1, -1)
    num_in, num_out = weight.shape
    assert x.shape == (1, num_in), (x.shape, weight.shape)

    x = x.astype(jnp.float32)
    weight = weight.astype(jnp.float32)

    # Tile sizes: lane-dense (multiples of 128), capped to padded array size.
    TN = min(tn, _round_up(num_out, 128))
    TK = min(tk, _round_up(num_in, 128))
    K_pad = _round_up(num_in, TK)
    N_pad = _round_up(num_out, TN)

    # Zero-pad so block shapes divide the array shapes (zeros are inert in
    # the dot; padded output columns are sliced off below).
    if K_pad != num_in:
        x = jnp.pad(x, ((0, 0), (0, K_pad - num_in)))
        weight = jnp.pad(weight, ((0, K_pad - num_in), (0, 0)))
    if N_pad != num_out:
        weight = jnp.pad(weight, ((0, 0), (0, N_pad - num_out)))

    grid = (N_pad // TN, K_pad // TK)  # N (parallel) first, K (reduction) last

    x_spec = pl.BlockSpec((1, TK), lambda j, k: (0, k))
    w_spec = pl.BlockSpec((TK, TN), lambda j, k: (k, j))
    o_spec = pl.BlockSpec((1, TN), lambda j, k: (0, j))

    out_shape = jax.ShapeDtypeStruct((1, N_pad), jnp.float32)
    scratch = [pltpu.VMEM((1, TN), jnp.float32)]
    compiler_params = pltpu.CompilerParams(
        dimension_semantics=("parallel", "arbitrary")
    )
    cost = pl.CostEstimate(
        flops=2 * num_in * num_out,
        transcendentals=0,
        bytes_accessed=4 * (num_in * num_out + num_in + 2 * num_out),
    )

    if bias is not None:
        bias = bias.astype(jnp.float32)
        if N_pad != num_out:
            bias = jnp.pad(bias, ((0, 0), (0, N_pad - num_out)))
        b_spec = pl.BlockSpec((1, TN), lambda j, k: (0, j))
        out = pl.pallas_call(
            _projection_bias_kernel,
            out_shape=out_shape,
            grid_spec=pltpu.PrefetchScalarGridSpec(
                num_scalar_prefetch=0,
                grid=grid,
                in_specs=[x_spec, w_spec, b_spec],
                out_specs=o_spec,
                scratch_shapes=scratch,
            ),
            compiler_params=compiler_params,
            cost_estimate=cost,
        )(x, weight, bias)
    else:
        out = pl.pallas_call(
            _projection_nobias_kernel,
            out_shape=out_shape,
            grid_spec=pltpu.PrefetchScalarGridSpec(
                num_scalar_prefetch=0,
                grid=grid,
                in_specs=[x_spec, w_spec],
                out_specs=o_spec,
                scratch_shapes=scratch,
            ),
            compiler_params=compiler_params,
            cost_estimate=cost,
        )(x, weight)

    if N_pad != num_out:
        out = out[:, :num_out]
    return out


if __name__ == "__main__":
    key = jax.random.PRNGKey(0)
    kx, kw, kb, kx2, kw2 = jax.random.split(key, 5)

    # --- Small case (matches the module's toy scale): num_in=32, num_out=128.
    # Input given as (8, 4) -> flattened to (1, 32), mimicking torch.view(1,-1).
    num_in, num_out = 32, 128
    x = jax.random.normal(kx, (8, 4), dtype=jnp.float32)
    weight = jax.random.normal(kw, (num_in, num_out), dtype=jnp.float32)
    bias = jax.random.normal(kb, (1, num_out), dtype=jnp.float32)

    out = jax.block_until_ready(projection_forward(x, weight, bias))
    ref = x.reshape(1, -1) @ weight + bias
    assert out.shape == (1, num_out)
    assert jnp.allclose(out, ref, atol=1e-5, rtol=1e-5), "mismatch (bias case)"

    # --- Modest multi-tile case (exercises N/K tiling, padding, no-bias path).
    num_in2, num_out2 = 1536, 640
    x2 = jax.random.normal(kx2, (1, num_in2), dtype=jnp.float32)
    w2 = jax.random.normal(kw2, (num_in2, num_out2), dtype=jnp.float32) * 0.05

    out2 = jax.block_until_ready(projection_forward(x2, w2, None))
    ref2 = x2 @ w2
    assert out2.shape == (1, num_out2)
    assert jnp.allclose(out2, ref2, atol=1e-3, rtol=1e-3), "mismatch (no-bias case)"

    print("KERNEL_OK")
</pallas_src>

<mosaic_0001>
module attributes {stable_mosaic.version = 11 : i64} {
  func.func @_projection_bias_kernel(%arg0: i32, %arg1: i32, %arg2: memref<1x128xf32, #tpu.memory_space<vmem>>, %arg3: memref<128x128xf32, #tpu.memory_space<vmem>>, %arg4: memref<1x128xf32, #tpu.memory_space<vmem>>, %arg5: memref<1x128xf32, #tpu.memory_space<vmem>>, %arg6: memref<1x128xf32, #tpu.memory_space<vmem>>) attributes {dimension_semantics = [#tpu.dimension_semantics<parallel>, #tpu.dimension_semantics<arbitrary>], iteration_bounds = array<i64: 1, 1>, scalar_prefetch = 0 : i64, scratch_operands = 1 : i64, tpu.core_type = #tpu.core_type<tc>, window_params = [{transform_indices = @transform_0, window_bounds = array<i64: 1, 128>}, {transform_indices = @transform_1, window_bounds = array<i64: 128, 128>}, {transform_indices = @transform_2, window_bounds = array<i64: 1, 128>}, {transform_indices = @transform_3, window_bounds = array<i64: 1, 128>}]} {
    %c0_i32 = arith.constant 0 : i32
    %0 = arith.cmpi eq, %arg1, %c0_i32 : i32
    %1 = arith.extui %0 : i1 to i32
    %c0_i32_0 = arith.constant 0 : i32
    %2 = arith.cmpi ne, %1, %c0_i32_0 : i32
    scf.if %2 {
      %c0_10 = arith.constant 0 : index
      %c0_11 = arith.constant 0 : index
      %12 = vector.load %arg4[%c0_10, %c0_11] : memref<1x128xf32, #tpu.memory_space<vmem>>, vector<1x128xf32>
      %c0_12 = arith.constant 0 : index
      %c0_13 = arith.constant 0 : index
      %13 = vector.load %arg6[%c0_12, %c0_13] : memref<1x128xf32, #tpu.memory_space<vmem>>, vector<1x128xf32>
      tpu.vector_store %arg6[%c0_12, %c0_13], %12 {strides = array<i32>} : memref<1x128xf32, #tpu.memory_space<vmem>>, vector<1x128xf32>,
    } else {
    }
    %c0 = arith.constant 0 : index
    %c0_1 = arith.constant 0 : index
    %3 = vector.load %arg6[%c0, %c0_1] : memref<1x128xf32, #tpu.memory_space<vmem>>, vector<1x128xf32>
    %c0_2 = arith.constant 0 : index
    %c0_3 = arith.constant 0 : index
    %4 = vector.load %arg2[%c0_2, %c0_3] : memref<1x128xf32, #tpu.memory_space<vmem>>, vector<1x128xf32>
    %c0_4 = arith.constant 0 : index
    %c0_5 = arith.constant 0 : index
    %5 = vector.load %arg3[%c0_4, %c0_5] : memref<128x128xf32, #tpu.memory_space<vmem>>, vector<128x128xf32>
    %cst = arith.constant dense<0.000000e+00> : vector<1x128xf32>
    %6 = tpu.matmul %4, %5, %cst {dimension_numbers = #tpu.dot_dimension_numbers<[1], [0], [0], [1], [0, 0, 1, 1], [], []>} : vector<1x128xf32>, vector<128x128xf32>, vector<1x128xf32> -> vector<1x128xf32>
    %7 = arith.addf %3, %6 : vector<1x128xf32>
    %c0_6 = arith.constant 0 : index
    %c0_7 = arith.constant 0 : index
    %8 = vector.load %arg6[%c0_6, %c0_7] : memref<1x128xf32, #tpu.memory_space<vmem>>, vector<1x128xf32>
    tpu.vector_store %arg6[%c0_6, %c0_7], %7 {strides = array<i32>} : memref<1x128xf32, #tpu.memory_space<vmem>>, vector<1x128xf32>,
    %c0_i32_8 = arith.constant 0 : i32
    %9 = arith.cmpi eq, %arg1, %c0_i32_8 : i32
    %10 = arith.extui %9 : i1 to i32
    %c0_i32_9 = arith.constant 0 : i32
    %11 = arith.cmpi ne, %10, %c0_i32_9 : i32
    scf.if %11 {
      %c0_10 = arith.constant 0 : index
      %c0_11 = arith.constant 0 : index
      %12 = vector.load %arg6[%c0_10, %c0_11] : memref<1x128xf32, #tpu.memory_space<vmem>>, vector<1x128xf32>
      %c0_12 = arith.constant 0 : index
      %c0_13 = arith.constant 0 : index
      %13 = vector.load %arg5[%c0_12, %c0_13] : memref<1x128xf32, #tpu.memory_space<vmem>>, vector<1x128xf32>
      tpu.vector_store %arg5[%c0_12, %c0_13], %12 {strides = array<i32>} : memref<1x128xf32, #tpu.memory_space<vmem>>, vector<1x128xf32>,
    } else {
    }
    return
  }
  func.func @transform_0(%arg0: i32, %arg1: i32) -> (i32, i32) {
    %c0_i32 = arith.constant 0 : i32
    %c0_i32_0 = arith.constant 0 : i32
    return %c0_i32, %arg1 : i32, i32
  }
  func.func @transform_1(%arg0: i32, %arg1: i32) -> (i32, i32) {
    %c0_i32 = arith.constant 0 : i32
    return %arg1, %arg0 : i32, i32
  }
  func.func @transform_2(%arg0: i32, %arg1: i32) -> (i32, i32) {
    %c0_i32 = arith.constant 0 : i32
    %c0_i32_0 = arith.constant 0 : i32
    return %c0_i32, %arg0 : i32, i32
  }
  func.func @transform_3(%arg0: i32, %arg1: i32) -> (i32, i32) {
    %c0_i32 = arith.constant 0 : i32
    %c0_i32_0 = arith.constant 0 : i32
    return %c0_i32, %arg0 : i32, i32
  }
}

</mosaic_0001>

<bundles_post_ra>
// kernel: tpu_custom_call.1
= control target key start
LH: loop header
LB: loop body
LE: loop exit
PB: predicated region body
PF: predicated region fallthrough
CT: control target
= control target key end

     0   :  { %8 = vsyncpa [#allocation4], 0  ;;  %s388_s0 = inlined_call_operand.hbm [shape: f32[1,128], index: 0, kind: input, shape index: {}]   ;;  %s389_s1 = inlined_call_operand.hbm [shape: f32[128,128], index: 1, kind: input, shape index: {}]   ;;  %s390_s2 = inlined_call_operand.vmem [shape: f32[1,128], index: 2, kind: input, shape index: {}]   ;;  %s391_s3 = inlined_call_operand.hbm [shape: f32[1,128], index: 3, kind: output, shape index: {}]  }
   0x1   :  { %9 = vsyncpa [#allocation7], 0 }
   0x2   :  { %10 = vsyncpa [#allocation5], 0  ;;  %s314_s12 = smov [#allocation3]   ;;  %s315_s14 = smov [#allocation6]  }
   0x3   :  { %s17_s13 = sshll.u32 %s314_s12, 4  ;;  %s26_s15 = sshll.u32 %s315_s14, 4  ;;  %s18_s13 = int_to_ptr.vmem [resolvable:$true] %s17_s13  ;;  %s342_s15 = int_to_ptr.vmem [resolvable:$true] %s26_s15 }
   0x4   :  { %s242_s18 = scalar_lea.hbm %s388_s0, 16 }
   0x5   :  { %p243_p0 = scmp.ne.s32.totalorder %s388_s0, %s242_s18  ;;  %p246_p1 = scmp.lt.u32.totalorder %s242_s18, %s388_s0 }
   0x7   :  { %p248_p2 = pnand %p246_p1, %p243_p0 }
   0x9   :  { %251 = shalt.err (!%p248_p2)
}
   0xa   :  { %s252_s23 = scalar_lea.vmem %s18_s13, 16  ;;  %s256_s24 = scalar_lea.vmem %s18_s13, 32 }
   0xb   :  { %p253_p3 = scmp.ne.s32.totalorder %s18_s13, %s252_s23  ;;  %p257_p4 = scmp.lt.s32.totalorder %s18_s13, %s18_s13 }
   0xc   :  { %p258_p5 = scmp.lt.s32.totalorder %s256_s24, %s252_s23 }
   0xe   :  { %p259_p6 = por %p258_p5, %p257_p4 }
  0x10   :  { %p260_p7 = pnand %p259_p6, %p253_p3 }
  0x12   :  { %263 = shalt.err (!%p260_p7)
}
  0x13   :  { %20 = dma.hbm_to_vmem [thread:$0]  %s388_s0, 16, %s18_s13, [#allocation4]  }
  0x14   :  { %s264_s29 = scalar_lea.hbm %s389_s1, 2048 }
  0x15   :  { %p265_p8 = scmp.ne.s32.totalorder %s389_s1, %s264_s29  ;;  %p268_p9 = scmp.lt.u32.totalorder %s264_s29, %s389_s1 }
  0x17   :  { %p270_p10 = pnand %p268_p9, %p265_p8 }
  0x19   :  { %273 = shalt.err (!%p270_p10)
}
  0x1a   :  { %s274_s7 = scalar_lea.vmem %s342_s15, 2048  ;;  %p279_p12 = scmp.lt.s32.totalorder %s342_s15, %s342_s15 }
  0x1b   :  { %p275_p11 = scmp.ne.s32.totalorder %s342_s15, %s274_s7  ;;  %p280_p13 = scmp.lt.s32.totalorder %s274_s7, %s274_s7 }
  0x1d   :  { %p281_p0 = por %p280_p13, %p279_p12 }
  0x1f   :  { %p282_p1 = pnand %p281_p0, %p275_p11 }
  0x21   :  { %285 = shalt.err (!%p282_p1)
}
  0x22   :  { %s316_s0 = smov 128   ;;  %s317_s8 = smov 8  }
  0x23   :  { %32 = dma.hbm_to_vmem [thread:$0]  %s389_s1, 2048, %s342_s15, [#allocation7], %s316_s0, %s316_s0, %s317_s8  }
  0x24   :  { %308 = dma.done.wait [#allocation4], 16  }
  0x25   :  { %309 = vsyncadd [#allocation4], 4294967280 }
  0x26   :  { %310 = dma.done.wait [#allocation7], 2048  }
  0x27   :  { %311 = vsyncadd [#allocation7], 4294965248  ;;  %v318_v0 = vmov 0.0|0.0   ;;  %vm319_vm0 = vmmov 0   ;;  %v320_v1 = vmov 0.0   ;;  %v49_v2 = vld [vmem:[#allocation6] sm:$0xff] }
  0x28   :  { %210 = vmatprep.subr.bf16.mxu0 %v318_v0  ;;  %207 = vmatprep.mubr.msk.f32.mxu0 %vm319_vm0, %v320_v1  ;;  %v50_v3 = vld [vmem:[#allocation6 + $0x8] sm:$0xff]  ;;  %v51_v4 = vld [vmem:[#allocation6 + $0x10] sm:$0xff]  ;;  %v52_v6 = vld [vmem:[#allocation6 + $0x18] sm:$0xff] }
  0x29   :  { %v211_v5 = vpack.c.bf16 %v50_v3, %v49_v2  ;;  %v214_v7 = vpack.c.bf16 %v52_v6, %v51_v4  ;;  %v53_v8 = vld [vmem:[#allocation6 + $0x20] sm:$0xff]  ;;  %v54_v9 = vld [vmem:[#allocation6 + $0x28] sm:$0xff]  ;;  %v45_v10 = vld [vmem:[%s390_s2] sm:$0x1]  ;;  %s321_s2 = smov [#allocation8]  }
  0x2a   :  { %46 = vst [vmem:[#allocation2] sm:$0x1] %v45_v10  ;;  %v217_v11 = vpack.c.bf16 %v54_v9, %v53_v8  ;;  %v55_v12 = vld [vmem:[#allocation6 + $0x30] sm:$0xff]  ;;  %v56_v13 = vld [vmem:[#allocation6 + $0x38] sm:$0xff]  ;;  %v57_v15 = vld [vmem:[#allocation6 + $0x40] sm:$0xff]  ;;  %s148_s12 = sshll.u32 %s321_s2, 4  ;;  %s149_s12 = int_to_ptr.vmem [resolvable:$true] %s148_s12 }
  0x2b   :  { %212 = vmatpush3.bf16.msra.mxu0 %v211_v5  ;;  %v220_v14 = vpack.c.bf16 %v56_v13, %v55_v12  ;;  %v58_v16 = vld [vmem:[#allocation6 + $0x48] sm:$0xff]  ;;  %v59_v18 = vld [vmem:[#allocation6 + $0x50] sm:$0xff]  ;;  %v60_v19 = vld [vmem:[#allocation6 + $0x58] sm:$0xff]  ;;  %s286_s13 = scalar_lea.vmem %s149_s12, 16  ;;  %s290_s14 = scalar_lea.vmem %s149_s12, 32 }
  0x2c   :  { %213 = vmatprep.subr.bf16.mxu0 %v318_v0  ;;  %v223_v17 = vpack.c.bf16 %v58_v16, %v57_v15  ;;  %v226_v20 = vpack.c.bf16 %v60_v19, %v59_v18  ;;  %v61_v21 = vld [vmem:[#allocation6 + $0x60] sm:$0xff]  ;;  %v62_v22 = vld [vmem:[#allocation6 + $0x68] sm:$0xff]  ;;  %v63_v24 = vld [vmem:[#allocation6 + $0x70] sm:$0xff]  ;;  %p287_p2 = scmp.ne.s32.totalorder %s149_s12, %s286_s13  ;;  %p291_p3 = scmp.lt.s32.totalorder %s149_s12, %s149_s12 }
  0x2d   :  { %v229_v23 = vpack.c.bf16 %v62_v22, %v61_v21  ;;  %v64_v25 = vld [vmem:[#allocation6 + $0x78] sm:$0xff]  ;;  %p292_p4 = scmp.lt.s32.totalorder %s290_s14, %s286_s13 }
  0x2e   :  { %v232_v26 = vpack.c.bf16 %v64_v25, %v63_v24  ;;  %v48_v27 = vld [vmem:[#allocation3] sm:$0x1] }
  0x2f   :  { %215 = vmatpush3.bf16.msra.mxu0 %v214_v7  ;;  %p293_p5 = por %p292_p4, %p291_p3 }
  0x30   :  { %216 = vmatprep.subr.bf16.mxu0 %v318_v0 }
  0x31   :  { %v47_v28 = vld [vmem:[#allocation2] sm:$0x1]  ;;  %p294_p6 = pnand %p293_p5, %p287_p2 }
  0x33   :  { %218 = vmatpush3.bf16.msra.mxu0 %v217_v11 }
  0x34   :  { %219 = vmatprep.subr.bf16.mxu0 %v318_v0 }
  0x37   :  { %221 = vmatpush3.bf16.msra.mxu0 %v220_v14 }
  0x38   :  { %222 = vmatprep.subr.bf16.mxu0 %v318_v0 }
  0x3b   :  { %224 = vmatpush3.bf16.msra.mxu0 %v223_v17 }
  0x3c   :  { %225 = vmatprep.subr.bf16.mxu0 %v318_v0 }
  0x3f   :  { %227 = vmatpush3.bf16.msra.mxu0 %v226_v20 }
  0x40   :  { %228 = vmatprep.subr.bf16.mxu0 %v318_v0 }
  0x43   :  { %230 = vmatpush3.bf16.msra.mxu0 %v229_v23 }
  0x44   :  { %231 = vmatprep.subr.bf16.mxu0 %v318_v0 }
  0x47   :  { %233 = vmatpush3.bf16.msra.mxu0 %v232_v26 }
  0x4a   :  { %208 = vmatmul.mubr.f32.vlgmr.msra.gmra.mrb[0].mxu0 %v48_v27 }
 0x11d   :  { %v131_v29 = vpop.f32.mrb[0].mxu0 }
 0x11e   :  { %v135_v30 = vadd.f32 %v131_v29, %v47_v28  ;;  %v209_v31 = vpop.f32.mrb[1].mxu0 }
 0x120   :  { %136 = vst [vmem:[#allocation2] sm:$0x1] %v135_v30 }
 0x127   :  { %v140_v32 = vld [vmem:[#allocation2] sm:$0x1] }
 0x128   :  { %141 = vst [vmem:[#allocation8] sm:$0x1] %v140_v32 }
 0x129   :  { %297 = shalt.err (!%p294_p6)
}
 0x12a   :  { %s298_s17 = scalar_lea.hbm %s391_s3, 16 }
 0x12b   :  { %p299_p7 = scmp.ne.s32.totalorder %s391_s3, %s298_s17  ;;  %p302_p8 = scmp.lt.u32.totalorder %s298_s17, %s391_s3 }
 0x12d   :  { %p304_p9 = pnand %p302_p8, %p299_p7 }
 0x12f   :  { %307 = shalt.err (!%p304_p9)
}
 0x130   :  { %151 = dma.vmem_to_hbm [thread:$0]  %s149_s12, 16, %s391_s3, [#allocation5]  }
 0x131   :  { %312 = dma.done.wait [#allocation5], 16  }
 0x132   :  { %313 = vsyncadd [#allocation5], 4294967280 }
 0x133   :  { %155 = vsyncpa [#allocation4], 1 }
 0x134   :  { %156 = vsyncpa [#allocation7], 1 }
 0x135   :  { %157 = vsyncpa [#allocation5], 1 }

</bundles_post_ra>
